<compile_context>
chip_gen: v6e
topology: v6e:2x2x1
jax: 0.10.0
libtpu: 0.0.40
codegen_flags: <defaults>
</compile_context>

<pallas_src>
import functools
from typing import NamedTuple

import jax
import jax.numpy as jnp
from jax import lax
from jax.experimental import pallas as pl
from jax.experimental.pallas import tpu as pltpu

EPS = 1e-5  # nn.LayerNorm default


def _round_up(x, m):
    return (x + m - 1) // m * m


def _cdiv(a, b):
    return (a + b - 1) // b


def _vmem_budget_bytes():
    """Usable VMEM for this kernel, leaving headroom for Mosaic internals."""
    cap = 64 << 20  # conservative default (v7x per-TensorCore VMEM)
    try:
        cap = int(pltpu.get_tpu_info().vmem_capacity_bytes)
    except Exception:
        pass
    # v7x: 64 MiB -> 48 MiB budget; v5e/v6e: 128 MiB -> 112 MiB budget.
    return max(cap - (16 << 20), 32 << 20)


class Plan(NamedTuple):
    mode: str          # "resident" | "stream"
    row_tile: int
    rows_pad: int
    d_pad: int
    k_pad: int
    k_tile: int        # 0 in resident mode
    w_buffers: int
    vmem_limit: int


def make_plan(rows, D, in_dtype, out_dtype, *, force_streaming=False,
              k_tile=None, budget=None):
    if budget is None:
        budget = _vmem_budget_bytes()
    in_bytes = jnp.dtype(in_dtype).itemsize
    out_bytes = jnp.dtype(out_dtype).itemsize
    d_pad = _round_up(D, 128)                     # lane-dense output
    param_bytes = 3 * 2 * d_pad * 4               # bias/gamma/beta buffers

    # >= 4 row tiles when rows allow (>= 2 per TensorCore on v7x); row tiles
    # are multiples of 16 (bf16 sublane packing).
    cap = max(16, _round_up(_cdiv(rows, 4), 16))

    def finish(mode, rt, kp, kt, wb, est):
        rows_pad = _round_up(rows, rt)
        vmem_limit = min(max(int(est * 2), 32 << 20), budget)
        return Plan(mode, rt, rows_pad, d_pad, kp, kt, wb, vmem_limit)

    # ---- Resident-weight path: whole bf16 (d_pad, d_pad) weight in VMEM ----
    if not force_streaming:
        w_res = d_pad * d_pad * 2
        cands = sorted({min(c, cap) for c in (256, 128, 64, 32, 16)},
                       reverse=True)
        for rt in cands:
            io = 2 * rt * d_pad * in_bytes + 2 * rt * d_pad * out_bytes
            for wb in (2, 1):  # wb==1 -> single-buffered W (pl.Buffered(1))
                est = wb * w_res + io + param_bytes
                if est <= budget:
                    return finish("resident", rt, d_pad, 0, wb, est)

    # ---- Streaming-K fallback (very large D): keep k_tile >= 256 ----
    if d_pad % 512 == 0:
        k_pad, kt_def = d_pad, 512
    elif d_pad % 256 == 0:
        k_pad, kt_def = d_pad, 256
    else:
        k_pad, kt_def = _round_up(D, 512), 512
    kt = k_tile if k_tile is not None else kt_def
    assert k_pad % kt == 0, (k_pad, kt)

    # v5e/v6e (large VMEM) prefer bigger row tiles to cut W re-streams.
    stream_target = 512 if budget >= (96 << 20) else 256
    cands = sorted({min(c, cap) for c in (stream_target, 256, 128, 64, 32, 16)},
                   reverse=True)
    est = 0
    for rt in cands:
        est = (2 * rt * kt * in_bytes            # x slab (double-buffered)
               + 2 * kt * d_pad * 2              # W slab bf16 (double-buffered)
               + rt * d_pad * 4                  # f32 accumulator scratch
               + 2 * rt * d_pad * out_bytes      # out tile (double-buffered)
               + param_bytes)
        if est <= budget:
            return finish("stream", rt, k_pad, kt, 2, est)
    return finish("stream", cands[-1], k_pad, kt, 2, est)


def prepare_params(w, b, gamma, beta, plan):
    """Pad/cast the static Linear+LayerNorm parameters.  Depends only on the
    weights and the plan -> hoist out of the per-step hot path in real use."""
    D = b.shape[0]
    d_pad, k_pad = plan.d_pad, plan.k_pad
    w_p = jnp.pad(w, ((0, k_pad - D), (0, d_pad - D))).astype(jnp.bfloat16)
    b_p = jnp.pad(b.astype(jnp.float32), (0, d_pad - D)).reshape(1, d_pad)
    g_p = jnp.pad(gamma.astype(jnp.float32), (0, d_pad - D)).reshape(1, d_pad)
    be_p = jnp.pad(beta.astype(jnp.float32), (0, d_pad - D)).reshape(1, d_pad)
    return w_p, b_p, g_p, be_p


def _layernorm(y, g, beta, d_valid):
    """LayerNorm over the last dim of f32 `y`; padded lanes masked out."""
    d_pad = y.shape[-1]
    inv_d = 1.0 / d_valid
    if d_valid == d_pad:
        mean = jnp.sum(y, axis=-1, keepdims=True) * inv_d
        diff = y - mean
        var = jnp.sum(diff * diff, axis=-1, keepdims=True) * inv_d
    else:
        lane = lax.broadcasted_iota(jnp.int32, (1, d_pad), 1)
        valid = lane < d_valid
        y_v = jnp.where(valid, y, 0.0)
        mean = jnp.sum(y_v, axis=-1, keepdims=True) * inv_d
        diff = jnp.where(valid, y - mean, 0.0)
        var = jnp.sum(diff * diff, axis=-1, keepdims=True) * inv_d
    inv = lax.rsqrt(var + EPS)                    # EUP slot
    return (diff * inv) * g + beta


def resident_kernel(x_ref, w_ref, b_ref, g_ref, beta_ref, o_ref, *, d_valid):
    """grid = (row_tiles,); the full weight stays resident in VMEM."""
    x = x_ref[...].astype(jnp.bfloat16)           # in-kernel cast, no HBM pass
    y = jnp.dot(x, w_ref[...], preferred_element_type=jnp.float32) + b_ref[...]
    o_ref[...] = _layernorm(y, g_ref[...], beta_ref[...],
                            d_valid).astype(o_ref.dtype)


def streaming_kernel(x_ref, w_ref, b_ref, g_ref, beta_ref, o_ref, acc_ref, *,
                     d_valid):
    """grid = (row_tiles, k_tiles); K is the matmul reduction axis."""
    k = pl.program_id(1)

    @pl.when(k == 0)
    def _():
        # Fold the bias into the accumulator init (saves an epilogue add).
        acc_ref[...] = jnp.broadcast_to(b_ref[...], acc_ref.shape)

    acc_ref[...] += jnp.dot(x_ref[...].astype(jnp.bfloat16), w_ref[...],
                            preferred_element_type=jnp.float32)

    @pl.when(k == pl.num_programs(1) - 1)
    def _():
        o_ref[...] = _layernorm(acc_ref[...], g_ref[...], beta_ref[...],
                                d_valid).astype(o_ref.dtype)


def post_norm(x, w, b, gamma, beta, *, force_streaming=False, k_tile=None):
    """x: (B, S, D). w: (D, D) in (in, out) layout. b/gamma/beta: (D,)."""
    orig_dtype = x.dtype
    B, S, D = x.shape
    assert w.shape == (D, D)
    rows = B * S

    plan = make_plan(rows, D, x.dtype, orig_dtype,
                     force_streaming=force_streaming, k_tile=k_tile)
    w_p, b_p, g_p, be_p = prepare_params(w, b, gamma, beta, plan)

    rows_pad, d_pad, k_pad, rt = plan.rows_pad, plan.d_pad, plan.k_pad, plan.row_tile
    x2 = x.reshape(rows, D)                       # free row-major reshape
    if rows_pad != rows or k_pad != D:
        x2 = jnp.pad(x2, ((0, rows_pad - rows), (0, k_pad - D)))
    # x stays in its native dtype; the bf16 cast happens inside the kernel.

    if plan.mode == "resident":
        grid = (rows_pad // rt,)
        w_spec_kw = {}
        if plan.w_buffers == 1:
            # Constant block index: fetched once; don't double-buffer a huge W.
            w_spec_kw["pipeline_mode"] = pl.Buffered(1)
        grid_spec = pltpu.PrefetchScalarGridSpec(
            num_scalar_prefetch=0,
            grid=grid,
            in_specs=[
                pl.BlockSpec((rt, k_pad), lambda i: (i, 0)),                   # x
                pl.BlockSpec((k_pad, d_pad), lambda i: (0, 0), **w_spec_kw),   # W resident
                pl.BlockSpec((1, d_pad), lambda i: (0, 0)),                    # bias
                pl.BlockSpec((1, d_pad), lambda i: (0, 0)),                    # gamma
                pl.BlockSpec((1, d_pad), lambda i: (0, 0)),                    # beta
            ],
            out_specs=pl.BlockSpec((rt, d_pad), lambda i: (i, 0)),
            scratch_shapes=[],
        )
        kernel = functools.partial(resident_kernel, d_valid=D)
        dim_sem = ("parallel",)
    else:
        kt = plan.k_tile
        grid = (rows_pad // rt, k_pad // kt)
        grid_spec = pltpu.PrefetchScalarGridSpec(
            num_scalar_prefetch=0,
            grid=grid,
            in_specs=[
                pl.BlockSpec((rt, kt), lambda i, k: (i, k)),       # x
                pl.BlockSpec((kt, d_pad), lambda i, k: (k, 0)),    # W slab
                pl.BlockSpec((1, d_pad), lambda i, k: (0, 0)),     # bias
                pl.BlockSpec((1, d_pad), lambda i, k: (0, 0)),     # gamma
                pl.BlockSpec((1, d_pad), lambda i, k: (0, 0)),     # beta
            ],
            out_specs=pl.BlockSpec((rt, d_pad), lambda i, k: (i, 0)),
            scratch_shapes=[pltpu.VMEM((rt, d_pad), jnp.float32)],
        )
        kernel = functools.partial(streaming_kernel, d_valid=D)
        dim_sem = ("parallel", "arbitrary")

    out2 = pl.pallas_call(
        kernel,
        out_shape=jax.ShapeDtypeStruct((rows_pad, d_pad), orig_dtype),
        grid_spec=grid_spec,
        compiler_params=pltpu.CompilerParams(
            dimension_semantics=dim_sem,
            vmem_limit_bytes=plan.vmem_limit,
        ),
    )(x2, w_p, b_p, g_p, be_p)

    if rows_pad == rows and d_pad == D:
        return out2.reshape(B, S, D)              # free row-major reshape
    return out2[:rows, :D].reshape(B, S, D)


def post_norm_reference(x, w, b, gamma, beta):
    y = jnp.einsum("bsd,de->bse", x.astype(jnp.float32),
                   w.astype(jnp.float32)) + b
    mean = jnp.mean(y, axis=-1, keepdims=True)
    var = jnp.mean(jnp.square(y - mean), axis=-1, keepdims=True)
    return ((y - mean) * lax.rsqrt(var + EPS)) * gamma + beta


if __name__ == "__main__":
    def make_case(key, B, S, D):
        kx, kw, kb = jax.random.split(key, 3)
        x = jax.random.normal(kx, (B, S, D), dtype=jnp.float32)
        bound = 1.0 / (D ** 0.5)
        w = jax.random.uniform(kw, (D, D), jnp.float32, -bound, bound)
        b = jax.random.uniform(kb, (D,), jnp.float32, -bound, bound)
        gamma = jnp.ones((D,), jnp.float32)   # LayerNorm default weight
        beta = jnp.zeros((D,), jnp.float32)   # LayerNorm default bias
        return x, w, b, gamma, beta

    key = jax.random.PRNGKey(0)
    k1, k2, k3 = jax.random.split(key, 3)

    # Case 1 (primary, resident-weight path): batch=2, seq=8, hidden=128.
    x, w, b, g, be = make_case(k1, 2, 8, 128)
    out = jax.block_until_ready(post_norm(x, w, b, g, be))
    ref = post_norm_reference(x, w, b, g, be)
    assert out.shape == (2, 8, 128)
    # bf16 matmul inputs (f32 accumulation) -> loosened tolerance vs f32 ref.
    assert jnp.allclose(out, ref, atol=3e-2, rtol=3e-2), "case1 mismatch"

    # Case 2: feature padding (D=96 -> 128 lanes, masked LN stats) and
    # row padding (rows=15 -> 16).
    x, w, b, g, be = make_case(k2, 3, 5, 96)
    out = jax.block_until_ready(post_norm(x, w, b, g, be))
    ref = post_norm_reference(x, w, b, g, be)
    assert out.shape == (3, 5, 96)
    assert jnp.allclose(out, ref, atol=3e-2, rtol=3e-2), "case2 mismatch"

    # Case 3: exercise the streaming-K accumulator path (used for very large D)
    # at a small shape with two K steps.
    x, w, b, g, be = make_case(k3, 2, 8, 512)
    out = jax.block_until_ready(post_norm(x, w, b, g, be,
                                          force_streaming=True, k_tile=256))
    ref = post_norm_reference(x, w, b, g, be)
    assert out.shape == (2, 8, 512)
    assert jnp.allclose(out, ref, atol=3e-2, rtol=3e-2), "case3 mismatch"

    print("KERNEL_OK")
</pallas_src>

<mosaic_0001>
module attributes {stable_mosaic.version = 11 : i64} {
  func.func @resident_kernel(%arg0: i32, %arg1: memref<16x128xf32, #tpu.memory_space<vmem>>, %arg2: memref<128x128xbf16, #tpu.memory_space<vmem>>, %arg3: memref<1x128xf32, #tpu.memory_space<vmem>>, %arg4: memref<1x128xf32, #tpu.memory_space<vmem>>, %arg5: memref<1x128xf32, #tpu.memory_space<vmem>>, %arg6: memref<16x128xf32, #tpu.memory_space<vmem>>) attributes {dimension_semantics = [#tpu.dimension_semantics<parallel>], iteration_bounds = array<i64: 1>, scalar_prefetch = 0 : i64, scratch_operands = 0 : i64, tpu.core_type = #tpu.core_type<tc>, window_params = [{transform_indices = @transform_0, window_bounds = array<i64: 16, 128>}, {pipeline_mode = #tpu.pipeline_mode<synchronous>, transform_indices = @transform_1, window_bounds = array<i64: 128, 128>}, {pipeline_mode = #tpu.pipeline_mode<synchronous>, transform_indices = @transform_2, window_bounds = array<i64: 1, 128>}, {pipeline_mode = #tpu.pipeline_mode<synchronous>, transform_indices = @transform_3, window_bounds = array<i64: 1, 128>}, {pipeline_mode = #tpu.pipeline_mode<synchronous>, transform_indices = @transform_4, window_bounds = array<i64: 1, 128>}, {transform_indices = @transform_5, window_bounds = array<i64: 16, 128>}]} {
    %c0 = arith.constant 0 : index
    %c0_0 = arith.constant 0 : index
    %0 = vector.load %arg1[%c0, %c0_0] : memref<16x128xf32, #tpu.memory_space<vmem>>, vector<16x128xf32>
    %1 = arith.truncf %0 : vector<16x128xf32> to vector<16x128xbf16>
    %c0_1 = arith.constant 0 : index
    %c0_2 = arith.constant 0 : index
    %2 = vector.load %arg2[%c0_1, %c0_2] : memref<128x128xbf16, #tpu.memory_space<vmem>>, vector<128x128xbf16>
    %cst = arith.constant dense<0.000000e+00> : vector<16x128xf32>
    %3 = tpu.matmul %1, %2, %cst {dimension_numbers = #tpu.dot_dimension_numbers<[1], [0], [0], [1], [0, 0, 1, 1], [], []>} : vector<16x128xbf16>, vector<128x128xbf16>, vector<16x128xf32> -> vector<16x128xf32>
    %c0_3 = arith.constant 0 : index
    %c0_4 = arith.constant 0 : index
    %4 = vector.load %arg3[%c0_3, %c0_4] : memref<1x128xf32, #tpu.memory_space<vmem>>, vector<1x128xf32>
    %5 = vector.broadcast %4 : vector<1x128xf32> to vector<16x128xf32>
    %6 = arith.addf %3, %5 : vector<16x128xf32>
    %c0_5 = arith.constant 0 : index
    %c0_6 = arith.constant 0 : index
    %7 = vector.load %arg4[%c0_5, %c0_6] : memref<1x128xf32, #tpu.memory_space<vmem>>, vector<1x128xf32>
    %c0_7 = arith.constant 0 : index
    %c0_8 = arith.constant 0 : index
    %8 = vector.load %arg5[%c0_7, %c0_8] : memref<1x128xf32, #tpu.memory_space<vmem>>, vector<1x128xf32>
    %cst_9 = arith.constant dense<0.000000e+00> : vector<16xf32>
    %9 = vector.multi_reduction <add>, %6, %cst_9 [1] : vector<16x128xf32> to vector<16xf32>
    %10 = vector.shape_cast %9 : vector<16xf32> to vector<16x1xf32>
    %cst_10 = arith.constant 7.812500e-03 : f32
    %11 = vector.broadcast %cst_10 : f32 to vector<16x1xf32>
    %12 = arith.mulf %10, %11 : vector<16x1xf32>
    %13 = vector.broadcast %12 : vector<16x1xf32> to vector<16x128xf32>
    %14 = arith.subf %6, %13 : vector<16x128xf32>
    %15 = arith.mulf %14, %14 : vector<16x128xf32>
    %cst_11 = arith.constant dense<0.000000e+00> : vector<16xf32>
    %16 = vector.multi_reduction <add>, %15, %cst_11 [1] : vector<16x128xf32> to vector<16xf32>
    %17 = vector.shape_cast %16 : vector<16xf32> to vector<16x1xf32>
    %cst_12 = arith.constant 7.812500e-03 : f32
    %18 = vector.broadcast %cst_12 : f32 to vector<16x1xf32>
    %19 = arith.mulf %17, %18 : vector<16x1xf32>
    %cst_13 = arith.constant 9.99999974E-6 : f32
    %20 = vector.broadcast %cst_13 : f32 to vector<16x1xf32>
    %21 = arith.addf %19, %20 : vector<16x1xf32>
    %22 = math.rsqrt %21 : vector<16x1xf32>
    %23 = vector.broadcast %22 : vector<16x1xf32> to vector<16x128xf32>
    %24 = arith.mulf %14, %23 : vector<16x128xf32>
    %25 = vector.broadcast %7 : vector<1x128xf32> to vector<16x128xf32>
    %26 = arith.mulf %24, %25 : vector<16x128xf32>
    %27 = vector.broadcast %8 : vector<1x128xf32> to vector<16x128xf32>
    %28 = arith.addf %26, %27 : vector<16x128xf32>
    %c0_14 = arith.constant 0 : index
    %c0_15 = arith.constant 0 : index
    %29 = vector.load %arg6[%c0_14, %c0_15] : memref<16x128xf32, #tpu.memory_space<vmem>>, vector<16x128xf32>
    tpu.vector_store %arg6[%c0_14, %c0_15], %28 {strides = array<i32>} : memref<16x128xf32, #tpu.memory_space<vmem>>, vector<16x128xf32>,
    return
  }
  func.func @transform_0(%arg0: i32) -> (i32, i32) {
    %c0_i32 = arith.constant 0 : i32
    %c0_i32_0 = arith.constant 0 : i32
    return %arg0, %c0_i32 : i32, i32
  }
  func.func @transform_1(%arg0: i32) -> (i32, i32) {
    %c0_i32 = arith.constant 0 : i32
    %c0_i32_0 = arith.constant 0 : i32
    %c0_i32_1 = arith.constant 0 : i32
    return %c0_i32, %c0_i32_0 : i32, i32
  }
  func.func @transform_2(%arg0: i32) -> (i32, i32) {
    %c0_i32 = arith.constant 0 : i32
    %c0_i32_0 = arith.constant 0 : i32
    %c0_i32_1 = arith.constant 0 : i32
    return %c0_i32, %c0_i32_0 : i32, i32
  }
  func.func @transform_3(%arg0: i32) -> (i32, i32) {
    %c0_i32 = arith.constant 0 : i32
    %c0_i32_0 = arith.constant 0 : i32
    %c0_i32_1 = arith.constant 0 : i32
    return %c0_i32, %c0_i32_0 : i32, i32
  }
  func.func @transform_4(%arg0: i32) -> (i32, i32) {
    %c0_i32 = arith.constant 0 : i32
    %c0_i32_0 = arith.constant 0 : i32
    %c0_i32_1 = arith.constant 0 : i32
    return %c0_i32, %c0_i32_0 : i32, i32
  }
  func.func @transform_5(%arg0: i32) -> (i32, i32) {
    %c0_i32 = arith.constant 0 : i32
    %c0_i32_0 = arith.constant 0 : i32
    return %arg0, %c0_i32 : i32, i32
  }
}

</mosaic_0001>

<bundles_post_ra>
// kernel: tpu_custom_call.1
= control target key start
LH: loop header
LB: loop body
LE: loop exit
PB: predicated region body
PF: predicated region fallthrough
CT: control target
= control target key end

     0   :  { %10 = vsyncpa [#allocation3], 0  ;;  %s415_s0 = inlined_call_operand.hbm [shape: f32[16,128], index: 0, kind: input, shape index: {}]   ;;  %s416_s1 = inlined_call_operand.hbm [shape: bf16[128,128], index: 1, kind: input, shape index: {}]   ;;  %s417_s2 = inlined_call_operand.vmem [shape: f32[1,128], index: 2, kind: input, shape index: {}]   ;;  %s418_s3 = inlined_call_operand.vmem [shape: f32[1,128], index: 3, kind: input, shape index: {}]   ;;  %s419_s4 = inlined_call_operand.vmem [shape: f32[1,128], index: 4, kind: input, shape index: {}]   ;;  %s420_s5 = inlined_call_operand.hbm [shape: f32[16,128], index: 5, kind: output, shape index: {}]  }
   0x1   :  { %11 = vsyncpa [#allocation6], 0 }
   0x2   :  { %12 = vsyncpa [#allocation4], 0  ;;  %s352_s18 = smov [#allocation2]  }
   0x3   :  { %s18_s19 = sshll.u32 %s352_s18, 4  ;;  %s19_s19 = int_to_ptr.vmem [resolvable:$true] %s18_s19 }
   0x4   :  { %s294_s20 = scalar_lea.vmem %s19_s19, 256  ;;  %p299_p1 = scmp.lt.s32.totalorder %s19_s19, %s19_s19 }
   0x5   :  { %p295_p0 = scmp.ne.s32.totalorder %s19_s19, %s294_s20  ;;  %p300_p2 = scmp.lt.s32.totalorder %s294_s20, %s294_s20 }
   0x7   :  { %p301_p3 = por %p300_p2, %p299_p1 }
   0x9   :  { %p302_p4 = pnand %p301_p3, %p295_p0 }
   0xb   :  { %305 = shalt.err (!%p302_p4)
}
   0xc   :  { %s353_s21 = smov 128   ;;  %s354_s22 = smov 8  }
   0xd   :  { %24 = dma.hbm_to_vmem [thread:$0]  %s415_s0, 256, %s19_s19, [#allocation3], %s353_s21, %s353_s21, %s354_s22  }
   0xe   :  { %s355_s25 = smov [#allocation5]  }
   0xf   :  { %s30_s26 = sshll.u32 %s355_s25, 4  ;;  %s31_s26 = int_to_ptr.vmem [resolvable:$true] %s30_s26 }
  0x10   :  { %s314_s27 = scalar_lea.vmem %s31_s26, 1024  ;;  %p319_p6 = scmp.lt.s32.totalorder %s31_s26, %s31_s26 }
  0x11   :  { %p315_p5 = scmp.ne.s32.totalorder %s31_s26, %s314_s27  ;;  %p320_p7 = scmp.lt.s32.totalorder %s314_s27, %s314_s27 }
  0x13   :  { %p321_p8 = por %p320_p7, %p319_p6 }
  0x15   :  { %p322_p9 = pnand %p321_p8, %p315_p5 }
  0x17   :  { %325 = shalt.err (!%p322_p9)
}
  0x18   :  { %s356_s28 = smov 64   ;;  %s357_s29 = smov 4  }
  0x19   :  { %36 = dma.hbm_to_vmem [thread:$0]  %s416_s1, 1024, %s31_s26, [#allocation6], %s356_s28, %s356_s28, %s357_s29  }
  0x1a   :  { %346 = dma.done.wait [#allocation3], 256  }
  0x1b   :  { %347 = vsyncadd [#allocation3], 4294967040 }
  0x1c   :  { %348 = dma.done.wait [#allocation6], 1024  }
  0x1d   :  { %349 = vsyncadd [#allocation6], 4294966272  ;;  %v358_v0 = vmov 0.0   ;;  %vm359_vm0 = vmmov 0   ;;  %v274_v1 = vld [vmem:[#allocation5 + $0x38] sm:$0xff]   ;;  %v275_v2 = vld [vmem:[#allocation5 + $0x30] sm:$0xff]  }
  0x1e   :  { %245 = vmatprep.subr.bf16.mxu0 %v358_v0  ;;  %261 = vmatprep.mubr.msk.bf16.mxu0 %vm359_vm0, %v358_v0  ;;  %v276_v3 = vld [vmem:[#allocation5 + $0x28] sm:$0xff]   ;;  %v277_v4 = vld [vmem:[#allocation5 + $0x20] sm:$0xff]   ;;  %v278_v5 = vld [vmem:[#allocation5 + $0x18] sm:$0xff]   ;;  %s360_s10 = smov [#allocation7]  }
  0x1f   :  { %246 = vmatpush3.bf16.msra.mxu0 %v274_v1  ;;  %v279_v6 = vld [vmem:[#allocation5 + $0x10] sm:$0xff]   ;;  %v280_v7 = vld [vmem:[#allocation5 + $0x8] sm:$0xff]   ;;  %v281_v8 = vld [vmem:[#allocation5] sm:$0xff]   ;;  %s212_s11 = sshll.u32 %s360_s10, 4  ;;  %s213_s11 = int_to_ptr.vmem [resolvable:$true] %s212_s11 }
  0x20   :  { %247 = vmatprep.subr.bf16.mxu0 %v358_v0  ;;  %v50_v9 = vld [vmem:[#allocation2] sm:$0xff]  ;;  %v51_v10 = vld [vmem:[#allocation2 + $0x8] sm:$0xff]  ;;  %s326_s12 = scalar_lea.vmem %s213_s11, 256  ;;  %p331_p11 = scmp.lt.s32.totalorder %s213_s11, %s213_s11 }
  0x21   :  { %v52_v11 = vpack.c.bf16 %v51_v10, %v50_v9  ;;  %v225_v12 = vld [vmem:[%s417_s2] ss:$0 sm:$0xff]  ;;  %p327_p10 = scmp.ne.s32.totalorder %s213_s11, %s326_s12  ;;  %p332_p12 = scmp.lt.s32.totalorder %s326_s12, %s326_s12 }
  0x22   :  { %v234_v34 = vld [vmem:[%s418_s3] ss:$0 sm:$0xff] }
  0x23   :  { %248 = vmatpush3.bf16.msra.mxu0 %v275_v2  ;;  %v235_v36 = vld [vmem:[%s419_s4] ss:$0 sm:$0xff]  ;;  %p333_p13 = por %p332_p12, %p331_p11 }
  0x24   :  { %249 = vmatprep.subr.bf16.mxu0 %v358_v0 }
  0x25   :  { %p334_p0 = pnand %p333_p13, %p327_p10 }
  0x27   :  { %250 = vmatpush3.bf16.msra.mxu0 %v276_v3 }
  0x28   :  { %251 = vmatprep.subr.bf16.mxu0 %v358_v0 }
  0x2b   :  { %252 = vmatpush3.bf16.msra.mxu0 %v277_v4 }
  0x2c   :  { %253 = vmatprep.subr.bf16.mxu0 %v358_v0 }
  0x2f   :  { %254 = vmatpush3.bf16.msra.mxu0 %v278_v5 }
  0x30   :  { %255 = vmatprep.subr.bf16.mxu0 %v358_v0 }
  0x33   :  { %256 = vmatpush3.bf16.msra.mxu0 %v279_v6 }
  0x34   :  { %257 = vmatprep.subr.bf16.mxu0 %v358_v0 }
  0x37   :  { %258 = vmatpush3.bf16.msra.mxu0 %v280_v7 }
  0x38   :  { %259 = vmatprep.subr.bf16.mxu0 %v358_v0 }
  0x3b   :  { %260 = vmatpush3.bf16.msra.mxu0 %v281_v8 }
  0x3e   :  { %262 = vmatmul.mubr.bf16.vlgmr.msra.gmra.mxu0 %v52_v11 }
  0xfe   :  { %v158_v13 = vpop.f32.mrf.mxu0 }
  0xff   :  { %v159_v14 = vadd.f32 %v225_v12, %v158_v13 }
 0x100   :  { %v263_v15 = vpop.f32.mrf.mxu0 }
 0x101   :  { %167 = vadd.xlane.f32.xlu0 %v159_v14 }
 0x102   :  { %v161_v16 = vpop.f32.mrf.mxu0 }
 0x103   :  { %v162_v17 = vadd.f32 %v225_v12, %v161_v16 }
 0x104   :  { %v264_v18 = vpop.f32.mrf.mxu0 }
 0x105   :  { %169 = vadd.xlane.f32.xlu0 %v162_v17 }
 0x18a   :  { %v168_v19 = vpop.xlane.xlu0 %167 }
 0x18b   :  { %v171_v20 = vmul.f32 0.0078125, %v168_v19 }
 0x18d   :  { %v173_v21 = vsub.f32 %v159_v14, %v171_v20 }
 0x18e   :  { %v170_v22 = vpop.xlane.xlu0 %169 }
 0x18f   :  { %v172_v23 = vmul.f32 0.0078125, %v170_v22  ;;  %v175_v24 = vmul.f32 %v173_v21, %v173_v21 }
 0x191   :  { %v174_v25 = vsub.f32 %v162_v17, %v172_v23  ;;  %177 = vadd.xlane.f32.xlu1 %v175_v24 }
 0x193   :  { %v176_v26 = vmul.f32 %v174_v25, %v174_v25 }
 0x195   :  { %179 = vadd.xlane.f32.xlu1 %v176_v26 }
 0x21a   :  { %v178_v27 = vpop.xlane.xlu1 %177 }
 0x21b   :  { %v181_v28 = vmul.f32 0.0078125, %v178_v27 }
 0x21d   :  { %v183_v29 = vadd.f32 1e-05, %v181_v28 }
 0x21e   :  { %v180_v30 = vpop.xlane.xlu1 %179 }
 0x21f   :  { %282 = vrsqrt.f32 %v183_v29  ;;  %v182_v31 = vmul.f32 0.0078125, %v180_v30 }
 0x221   :  { %v184_v32 = vadd.f32 1e-05, %v182_v31 }
 0x223   :  { %284 = vrsqrt.f32 %v184_v32 }
 0x22c   :  { %v283_v33 = vpop.eup %282 }
 0x22d   :  { %v187_v35 = vmul.f32 %v283_v33, %v173_v21 }
 0x22f   :  { %v195_v37 = vmul.f32 %v234_v34, %v187_v35 }
 0x230   :  { %v285_v38 = vpop.eup %284 }
 0x231   :  { %v188_v39 = vmul.f32 %v285_v38, %v174_v25  ;;  %v203_v40 = vadd.f32 %v235_v36, %v195_v37 }
 0x233   :  { %v196_v41 = vmul.f32 %v234_v34, %v188_v39  ;;  %205 = vst [vmem:[#allocation7] sm:$0xff] %v203_v40 }
 0x235   :  { %v204_v42 = vadd.f32 %v235_v36, %v196_v41 }
 0x237   :  { %206 = vst [vmem:[#allocation7 + $0x8] sm:$0xff] %v204_v42 }
 0x238   :  { %337 = shalt.err (!%p334_p0)
}
 0x239   :  { %218 = dma.vmem_to_hbm [thread:$0]  %s213_s11, 256, %s420_s5, [#allocation4], %s353_s21, %s353_s21, %s354_s22  }
 0x23a   :  { %350 = dma.done.wait [#allocation4], 256  }
 0x23b   :  { %351 = vsyncadd [#allocation4], 4294967040 }
 0x23c   :  { %222 = vsyncpa [#allocation3], 1 }
 0x23d   :  { %223 = vsyncpa [#allocation6], 1 }
 0x23e   :  { %224 = vsyncpa [#allocation4], 1 }

</bundles_post_ra>
